<compile_context>
chip_gen: v5e
topology: v5e:2x2
jax: 0.10.0
libtpu: 0.0.40
codegen_flags: <defaults>
</compile_context>

<pallas_src>
import jax
import jax.numpy as jnp
from jax import lax
from jax.experimental import pallas as pl
from jax.experimental.pallas import tpu as pltpu

EPS = 1e-3


def _relu_dwconv_bn_kernel(x_ref, w_ref, gamma_ref, beta_ref, o_ref, xp_ref):
    # x_ref:     (N, H, W, C)        unpadded NHWC input
    # w_ref:     (3, 3, 1, C)        depthwise filter taps
    # gamma_ref: (1, 1, 1, C)
    # beta_ref:  (1, 1, 1, C)
    # o_ref:     (N, H, W, C)
    # xp_ref:    (N, H+2, W+2, C)    VMEM scratch: zero-padded relu(x)
    N, H, W, C = x_ref.shape
    Wp = W + 2

    # ---- Border-only zeroing of the padded scratch (4 thin strips) -------
    zero_row = jnp.zeros((N, 1, Wp, C), jnp.float32)
    xp_ref[:, 0:1, :, :] = zero_row                      # top halo row
    xp_ref[:, H + 1:H + 2, :, :] = zero_row              # bottom halo row
    zero_col = jnp.zeros((N, H, 1, C), jnp.float32)
    xp_ref[:, 1:H + 1, 0:1, :] = zero_col                # left halo column
    xp_ref[:, 1:H + 1, W + 1:W + 2, :] = zero_col        # right halo column

    # ---- Per-row ReLU fill of the interior (keeps rows register-resident) -
    @pl.loop(0, H)
    def _fill(h):
        xp_ref[:, pl.ds(h + 1, 1), 1:W + 1, :] = jnp.maximum(
            x_ref[:, pl.ds(h, 1), :, :], 0.0)

    # ---- Hoisted per-channel weight taps (each a (1, C) value) ------------
    wgt = [[w_ref[dh, dw, :, :] for dw in range(3)] for dh in range(3)]

    # ---- Per-row depthwise 3x3 conv + fused BN statistics ------------------
    # For each output row h:
    #   * load the 3 padded input rows h, h+1, h+2 once each, full width Wp
    #     (H offsets are free base-address changes, loads are sublane-aligned)
    #   * build 3 per-dw column sums  col_dw = sum_dh w[dh,dw] * row[h+dh]
    #   * pay the dw sublane shift once per column sum (2 shifted slices)
    #   * accumulate BN sum / sum-of-squares while the row is in registers
    #   * store the un-normalized row into o_ref (normalized in a 2nd pass)
    def row_body(h, carry):
        s, ss = carry
        cols = [None, None, None]
        for dh in range(3):
            r = xp_ref[:, pl.ds(h + dh, 1), :, :]          # (N,1,Wp,C) aligned
            for dw in range(3):
                t = r * wgt[dh][dw]
                cols[dw] = t if cols[dw] is None else cols[dw] + t
        acc = (cols[0][:, :, 0:W, :]
               + cols[1][:, :, 1:W + 1, :]
               + cols[2][:, :, 2:W + 2, :])                 # (N,1,W,C)
        s = s + jnp.sum(acc, axis=(0, 1, 2), keepdims=True)
        ss = ss + jnp.sum(acc * acc, axis=(0, 1, 2), keepdims=True)
        o_ref[:, pl.ds(h, 1), :, :] = acc                   # un-normalized
        return s, ss

    zc = jnp.zeros((1, 1, 1, C), jnp.float32)
    s, ss = lax.fori_loop(0, H, row_body, (zc, zc))

    # ---- BatchNorm2d (training mode, biased variance), folded -------------
    inv_cnt = jnp.float32(1.0 / (N * H * W))
    mean = s * inv_cnt
    var = jnp.maximum(ss * inv_cnt - mean * mean, 0.0)
    scale = gamma_ref[...] * lax.rsqrt(var + EPS)            # (1,1,1,C)
    shift = beta_ref[...] - mean * scale                     # (1,1,1,C)
    # Hoisted broadcasts (done once, reused every row of the normalize loop).
    scale_b = jnp.broadcast_to(scale, (N, 1, W, C))
    shift_b = jnp.broadcast_to(shift, (N, 1, W, C))

    # ---- Per-row in-place normalize pass -----------------------------------
    @pl.loop(0, H)
    def _norm(h):
        o_ref[:, pl.ds(h, 1), :, :] = (
            o_ref[:, pl.ds(h, 1), :, :] * scale_b + shift_b)


def relu_dwconv_bn(x_nchw, w_dw, gamma, beta):
    """x_nchw: (N, C, H, W) f32; w_dw: (C, 1, 3, 3) f32; gamma/beta: (C,) f32.

    Returns the same NCHW result as:
        BatchNorm2d(C, eps=1e-3)(Conv2d(C, C, 3, pad=1, groups=C, bias=False)(ReLU(x)))
    in PyTorch train mode (batch statistics).
    """
    N, C, H, W = x_nchw.shape

    # Glue kept in XLA: module contract is NCHW, kernel computes in NHWC
    # (C=192 on the lane axis, W on sublanes).
    x = jnp.transpose(x_nchw, (0, 2, 3, 1)).astype(jnp.float32)            # NHWC
    w = jnp.transpose(w_dw[:, 0, :, :], (1, 2, 0)).reshape(3, 3, 1, C)     # (3,3,1,C)
    w = w.astype(jnp.float32)
    g = gamma.reshape(1, 1, 1, C).astype(jnp.float32)
    b = beta.reshape(1, 1, 1, C).astype(jnp.float32)

    out_nhwc = pl.pallas_call(
        _relu_dwconv_bn_kernel,
        out_shape=jax.ShapeDtypeStruct((N, H, W, C), jnp.float32),
        in_specs=[pl.BlockSpec(memory_space=pltpu.MemorySpace.VMEM)] * 4,
        out_specs=pl.BlockSpec(memory_space=pltpu.MemorySpace.VMEM),
        scratch_shapes=[pltpu.VMEM((N, H + 2, W + 2, C), jnp.float32)],
    )(x, w, g, b)

    return jnp.transpose(out_nhwc, (0, 3, 1, 2))                            # NCHW


if __name__ == "__main__":
    key = jax.random.PRNGKey(0)
    kx, kw, kg, kb = jax.random.split(key, 4)

    # Shapes implied by the module (C is fixed at 192 by the depthwise conv).
    N, C, H, W = 1, 192, 28, 28
    x = jax.random.normal(kx, (N, C, H, W), dtype=jnp.float32)
    w_dw = 0.1 * jax.random.normal(kw, (C, 1, 3, 3), dtype=jnp.float32)
    gamma = 1.0 + 0.1 * jax.random.normal(kg, (C,), dtype=jnp.float32)
    beta = 0.1 * jax.random.normal(kb, (C,), dtype=jnp.float32)

    fn = jax.jit(relu_dwconv_bn)
    out = fn(x, w_dw, gamma, beta)
    jax.block_until_ready(out)
    assert out.shape == (N, C, H, W)

    # Pure-JAX reference (PyTorch train-mode semantics) for a sanity check.
    xr = jnp.maximum(x, 0.0)
    xp = jnp.pad(xr, ((0, 0), (0, 0), (1, 1), (1, 1)))
    conv = jnp.zeros((N, C, H, W), jnp.float32)
    for dh in range(3):
        for dw in range(3):
            conv = conv + xp[:, :, dh:dh + H, dw:dw + W] * \
                w_dw[:, 0, dh, dw][None, :, None, None]
    mean = jnp.mean(conv, axis=(0, 2, 3), keepdims=True)
    var = jnp.mean((conv - mean) ** 2, axis=(0, 2, 3), keepdims=True)
    ref = (conv - mean) / jnp.sqrt(var + EPS) * gamma[None, :, None, None] \
        + beta[None, :, None, None]

    err = float(jnp.max(jnp.abs(out - ref)))
    assert jnp.allclose(out, ref, rtol=2e-3, atol=2e-3), err
    print("KERNEL_OK")
</pallas_src>

<mosaic_0001>
module attributes {stable_mosaic.version = 11 : i64} {
  func.func @_relu_dwconv_bn_kernel(%arg0: memref<1x28x28x192xf32, #tpu.memory_space<vmem>>, %arg1: memref<3x3x1x192xf32, #tpu.memory_space<vmem>>, %arg2: memref<1x1x1x192xf32, #tpu.memory_space<vmem>>, %arg3: memref<1x1x1x192xf32, #tpu.memory_space<vmem>>, %arg4: memref<1x28x28x192xf32, #tpu.memory_space<vmem>>, %arg5: memref<1x30x30x192xf32, #tpu.memory_space<vmem>>) attributes {dimension_semantics = [], scalar_prefetch = 0 : i64, scratch_operands = 1 : i64, tpu.core_type = #tpu.core_type<tc>} {
    %cst = arith.constant 0.000000e+00 : f32
    %0 = vector.broadcast %cst : f32 to vector<1x1x30x192xf32>
    %c0 = arith.constant 0 : index
    %c0_0 = arith.constant 0 : index
    %c0_1 = arith.constant 0 : index
    %c0_2 = arith.constant 0 : index
    %1 = vector.load %arg5[%c0, %c0_0, %c0_1, %c0_2] : memref<1x30x30x192xf32, #tpu.memory_space<vmem>>, vector<1x1x30x192xf32>
    tpu.vector_store %arg5[%c0, %c0_0, %c0_1, %c0_2], %0 {strides = array<i32>} : memref<1x30x30x192xf32, #tpu.memory_space<vmem>>, vector<1x1x30x192xf32>,
    %c0_3 = arith.constant 0 : index
    %c29 = arith.constant 29 : index
    %c0_4 = arith.constant 0 : index
    %c0_5 = arith.constant 0 : index
    %2 = vector.load %arg5[%c0_3, %c29, %c0_4, %c0_5] : memref<1x30x30x192xf32, #tpu.memory_space<vmem>>, vector<1x1x30x192xf32>
    tpu.vector_store %arg5[%c0_3, %c29, %c0_4, %c0_5], %0 {strides = array<i32>} : memref<1x30x30x192xf32, #tpu.memory_space<vmem>>, vector<1x1x30x192xf32>,
    %cst_6 = arith.constant 0.000000e+00 : f32
    %3 = vector.broadcast %cst_6 : f32 to vector<1x28x1x192xf32>
    %c0_7 = arith.constant 0 : index
    %c1 = arith.constant 1 : index
    %c0_8 = arith.constant 0 : index
    %c0_9 = arith.constant 0 : index
    %4 = vector.load %arg5[%c0_7, %c1, %c0_8, %c0_9] : memref<1x30x30x192xf32, #tpu.memory_space<vmem>>, vector<1x28x1x192xf32>
    tpu.vector_store %arg5[%c0_7, %c1, %c0_8, %c0_9], %3 {strides = array<i32>} : memref<1x30x30x192xf32, #tpu.memory_space<vmem>>, vector<1x28x1x192xf32>,
    %c0_10 = arith.constant 0 : index
    %c1_11 = arith.constant 1 : index
    %c29_12 = arith.constant 29 : index
    %c0_13 = arith.constant 0 : index
    %5 = vector.load %arg5[%c0_10, %c1_11, %c29_12, %c0_13] : memref<1x30x30x192xf32, #tpu.memory_space<vmem>>, vector<1x28x1x192xf32>
    tpu.vector_store %arg5[%c0_10, %c1_11, %c29_12, %c0_13], %3 {strides = array<i32>} : memref<1x30x30x192xf32, #tpu.memory_space<vmem>>, vector<1x28x1x192xf32>,
    %c0_i32 = arith.constant 0 : i32
    %c28_i32 = arith.constant 28 : i32
    %6 = arith.addi %c0_i32, %c28_i32 : i32
    %c1_i32 = arith.constant 1 : i32
    scf.for %arg6 = %c0_i32 to %6 step %c1_i32  : i32 {
      %c1_i32_71 = arith.constant 1 : i32
      %49 = arith.muli %arg6, %c1_i32_71 : i32
      %c0_i32_72 = arith.constant 0 : i32
      %50 = arith.addi %c0_i32_72, %49 : i32
      %c0_73 = arith.constant 0 : index
      %51 = arith.index_cast %50 : i32 to index
      %c0_74 = arith.constant 0 : index
      %c0_75 = arith.constant 0 : index
      %52 = vector.load %arg0[%c0_73, %51, %c0_74, %c0_75] : memref<1x28x28x192xf32, #tpu.memory_space<vmem>>, vector<1x1x28x192xf32>
      %cst_76 = arith.constant 0.000000e+00 : f32
      %53 = vector.broadcast %cst_76 : f32 to vector<1x1x28x192xf32>
      %54 = arith.maximumf %52, %53 : vector<1x1x28x192xf32>
      %c1_i32_77 = arith.constant 1 : i32
      %55 = arith.addi %50, %c1_i32_77 : i32
      %c0_78 = arith.constant 0 : index
      %56 = arith.index_cast %55 : i32 to index
      %c1_79 = arith.constant 1 : index
      %c0_80 = arith.constant 0 : index
      %57 = vector.load %arg5[%c0_78, %56, %c1_79, %c0_80] : memref<1x30x30x192xf32, #tpu.memory_space<vmem>>, vector<1x1x28x192xf32>
      tpu.vector_store %arg5[%c0_78, %56, %c1_79, %c0_80], %54 {strides = array<i32>} : memref<1x30x30x192xf32, #tpu.memory_space<vmem>>, vector<1x1x28x192xf32>,
    }
    %c28_i32_14 = arith.constant 28 : i32
    %c0_15 = arith.constant 0 : index
    %c0_16 = arith.constant 0 : index
    %c0_17 = arith.constant 0 : index
    %c0_18 = arith.constant 0 : index
    %7 = vector.load %arg1[%c0_15, %c0_16, %c0_17, %c0_18] : memref<3x3x1x192xf32, #tpu.memory_space<vmem>>, vector<1x1x1x192xf32>
    %8 = vector.shape_cast %7 : vector<1x1x1x192xf32> to vector<1x192xf32>
    %c0_19 = arith.constant 0 : index
    %c1_20 = arith.constant 1 : index
    %c0_21 = arith.constant 0 : index
    %c0_22 = arith.constant 0 : index
    %9 = vector.load %arg1[%c0_19, %c1_20, %c0_21, %c0_22] : memref<3x3x1x192xf32, #tpu.memory_space<vmem>>, vector<1x1x1x192xf32>
    %10 = vector.shape_cast %9 : vector<1x1x1x192xf32> to vector<1x192xf32>
    %c0_23 = arith.constant 0 : index
    %c2 = arith.constant 2 : index
    %c0_24 = arith.constant 0 : index
    %c0_25 = arith.constant 0 : index
    %11 = vector.load %arg1[%c0_23, %c2, %c0_24, %c0_25] : memref<3x3x1x192xf32, #tpu.memory_space<vmem>>, vector<1x1x1x192xf32>
    %12 = vector.shape_cast %11 : vector<1x1x1x192xf32> to vector<1x192xf32>
    %c1_26 = arith.constant 1 : index
    %c0_27 = arith.constant 0 : index
    %c0_28 = arith.constant 0 : index
    %c0_29 = arith.constant 0 : index
    %13 = vector.load %arg1[%c1_26, %c0_27, %c0_28, %c0_29] : memref<3x3x1x192xf32, #tpu.memory_space<vmem>>, vector<1x1x1x192xf32>
    %14 = vector.shape_cast %13 : vector<1x1x1x192xf32> to vector<1x192xf32>
    %c1_30 = arith.constant 1 : index
    %c1_31 = arith.constant 1 : index
    %c0_32 = arith.constant 0 : index
    %c0_33 = arith.constant 0 : index
    %15 = vector.load %arg1[%c1_30, %c1_31, %c0_32, %c0_33] : memref<3x3x1x192xf32, #tpu.memory_space<vmem>>, vector<1x1x1x192xf32>
    %16 = vector.shape_cast %15 : vector<1x1x1x192xf32> to vector<1x192xf32>
    %c1_34 = arith.constant 1 : index
    %c2_35 = arith.constant 2 : index
    %c0_36 = arith.constant 0 : index
    %c0_37 = arith.constant 0 : index
    %17 = vector.load %arg1[%c1_34, %c2_35, %c0_36, %c0_37] : memref<3x3x1x192xf32, #tpu.memory_space<vmem>>, vector<1x1x1x192xf32>
    %18 = vector.shape_cast %17 : vector<1x1x1x192xf32> to vector<1x192xf32>
    %c2_38 = arith.constant 2 : index
    %c0_39 = arith.constant 0 : index
    %c0_40 = arith.constant 0 : index
    %c0_41 = arith.constant 0 : index
    %19 = vector.load %arg1[%c2_38, %c0_39, %c0_40, %c0_41] : memref<3x3x1x192xf32, #tpu.memory_space<vmem>>, vector<1x1x1x192xf32>
    %20 = vector.shape_cast %19 : vector<1x1x1x192xf32> to vector<1x192xf32>
    %c2_42 = arith.constant 2 : index
    %c1_43 = arith.constant 1 : index
    %c0_44 = arith.constant 0 : index
    %c0_45 = arith.constant 0 : index
    %21 = vector.load %arg1[%c2_42, %c1_43, %c0_44, %c0_45] : memref<3x3x1x192xf32, #tpu.memory_space<vmem>>, vector<1x1x1x192xf32>
    %22 = vector.shape_cast %21 : vector<1x1x1x192xf32> to vector<1x192xf32>
    %c2_46 = arith.constant 2 : index
    %c2_47 = arith.constant 2 : index
    %c0_48 = arith.constant 0 : index
    %c0_49 = arith.constant 0 : index
    %23 = vector.load %arg1[%c2_46, %c2_47, %c0_48, %c0_49] : memref<3x3x1x192xf32, #tpu.memory_space<vmem>>, vector<1x1x1x192xf32>
    %24 = vector.shape_cast %23 : vector<1x1x1x192xf32> to vector<1x192xf32>
    %cst_50 = arith.constant 0.000000e+00 : f32
    %25 = vector.broadcast %cst_50 : f32 to vector<1x1x1x192xf32>
    %c0_i32_51 = arith.constant 0 : i32
    %c28_i32_52 = arith.constant 28 : i32
    %26 = arith.addi %c0_i32_51, %c28_i32_52 : i32
    %c1_i32_53 = arith.constant 1 : i32
    %27:2 = scf.for %arg6 = %c0_i32_51 to %26 step %c1_i32_53 iter_args(%arg7 = %25, %arg8 = %25) -> (vector<1x1x1x192xf32>, vector<1x1x1x192xf32>)  : i32 {
      %c0_i32_71 = arith.constant 0 : i32
      %49 = arith.addi %arg6, %c0_i32_71 : i32
      %c0_72 = arith.constant 0 : index
      %50 = arith.index_cast %49 : i32 to index
      %c0_73 = arith.constant 0 : index
      %c0_74 = arith.constant 0 : index
      %51 = vector.load %arg5[%c0_72, %50, %c0_73, %c0_74] : memref<1x30x30x192xf32, #tpu.memory_space<vmem>>, vector<1x1x30x192xf32>
      %52 = vector.shape_cast %8 : vector<1x192xf32> to vector<1x1x1x192xf32>
      %53 = vector.broadcast %52 : vector<1x1x1x192xf32> to vector<1x1x30x192xf32>
      %54 = arith.mulf %51, %53 : vector<1x1x30x192xf32>
      %55 = vector.shape_cast %10 : vector<1x192xf32> to vector<1x1x1x192xf32>
      %56 = vector.broadcast %55 : vector<1x1x1x192xf32> to vector<1x1x30x192xf32>
      %57 = arith.mulf %51, %56 : vector<1x1x30x192xf32>
      %58 = vector.shape_cast %12 : vector<1x192xf32> to vector<1x1x1x192xf32>
      %59 = vector.broadcast %58 : vector<1x1x1x192xf32> to vector<1x1x30x192xf32>
      %60 = arith.mulf %51, %59 : vector<1x1x30x192xf32>
      %c1_i32_75 = arith.constant 1 : i32
      %61 = arith.addi %arg6, %c1_i32_75 : i32
      %c0_76 = arith.constant 0 : index
      %62 = arith.index_cast %61 : i32 to index
      %c0_77 = arith.constant 0 : index
      %c0_78 = arith.constant 0 : index
      %63 = vector.load %arg5[%c0_76, %62, %c0_77, %c0_78] : memref<1x30x30x192xf32, #tpu.memory_space<vmem>>, vector<1x1x30x192xf32>
      %64 = vector.shape_cast %14 : vector<1x192xf32> to vector<1x1x1x192xf32>
      %65 = vector.broadcast %64 : vector<1x1x1x192xf32> to vector<1x1x30x192xf32>
      %66 = arith.mulf %63, %65 : vector<1x1x30x192xf32>
      %67 = arith.addf %54, %66 : vector<1x1x30x192xf32>
      %68 = vector.shape_cast %16 : vector<1x192xf32> to vector<1x1x1x192xf32>
      %69 = vector.broadcast %68 : vector<1x1x1x192xf32> to vector<1x1x30x192xf32>
      %70 = arith.mulf %63, %69 : vector<1x1x30x192xf32>
      %71 = arith.addf %57, %70 : vector<1x1x30x192xf32>
      %72 = vector.shape_cast %18 : vector<1x192xf32> to vector<1x1x1x192xf32>
      %73 = vector.broadcast %72 : vector<1x1x1x192xf32> to vector<1x1x30x192xf32>
      %74 = arith.mulf %63, %73 : vector<1x1x30x192xf32>
      %75 = arith.addf %60, %74 : vector<1x1x30x192xf32>
      %c2_i32 = arith.constant 2 : i32
      %76 = arith.addi %arg6, %c2_i32 : i32
      %c0_79 = arith.constant 0 : index
      %77 = arith.index_cast %76 : i32 to index
      %c0_80 = arith.constant 0 : index
      %c0_81 = arith.constant 0 : index
      %78 = vector.load %arg5[%c0_79, %77, %c0_80, %c0_81] : memref<1x30x30x192xf32, #tpu.memory_space<vmem>>, vector<1x1x30x192xf32>
      %79 = vector.shape_cast %20 : vector<1x192xf32> to vector<1x1x1x192xf32>
      %80 = vector.broadcast %79 : vector<1x1x1x192xf32> to vector<1x1x30x192xf32>
      %81 = arith.mulf %78, %80 : vector<1x1x30x192xf32>
      %82 = arith.addf %67, %81 : vector<1x1x30x192xf32>
      %83 = vector.shape_cast %22 : vector<1x192xf32> to vector<1x1x1x192xf32>
      %84 = vector.broadcast %83 : vector<1x1x1x192xf32> to vector<1x1x30x192xf32>
      %85 = arith.mulf %78, %84 : vector<1x1x30x192xf32>
      %86 = arith.addf %71, %85 : vector<1x1x30x192xf32>
      %87 = vector.shape_cast %24 : vector<1x192xf32> to vector<1x1x1x192xf32>
      %88 = vector.broadcast %87 : vector<1x1x1x192xf32> to vector<1x1x30x192xf32>
      %89 = arith.mulf %78, %88 : vector<1x1x30x192xf32>
      %90 = arith.addf %75, %89 : vector<1x1x30x192xf32>
      %91 = vector.extract_strided_slice %82 {offsets = [0, 0, 0, 0], sizes = [1, 1, 28, 192], strides = [1, 1, 1, 1]} : vector<1x1x30x192xf32> to vector<1x1x28x192xf32>
      %92 = vector.extract_strided_slice %86 {offsets = [0, 0, 1, 0], sizes = [1, 1, 28, 192], strides = [1, 1, 1, 1]} : vector<1x1x30x192xf32> to vector<1x1x28x192xf32>
      %93 = arith.addf %91, %92 : vector<1x1x28x192xf32>
      %94 = vector.extract_strided_slice %90 {offsets = [0, 0, 2, 0], sizes = [1, 1, 28, 192], strides = [1, 1, 1, 1]} : vector<1x1x30x192xf32> to vector<1x1x28x192xf32>
      %95 = arith.addf %93, %94 : vector<1x1x28x192xf32>
      %cst_82 = arith.constant dense<0.000000e+00> : vector<192xf32>
      %96 = vector.multi_reduction <add>, %95, %cst_82 [0, 1, 2] : vector<1x1x28x192xf32> to vector<192xf32>
      %97 = vector.shape_cast %96 : vector<192xf32> to vector<1x1x1x192xf32>
      %98 = arith.addf %arg7, %97 : vector<1x1x1x192xf32>
      %99 = arith.mulf %95, %95 : vector<1x1x28x192xf32>
      %cst_83 = arith.constant dense<0.000000e+00> : vector<192xf32>
      %100 = vector.multi_reduction <add>, %99, %cst_83 [0, 1, 2] : vector<1x1x28x192xf32> to vector<192xf32>
      %101 = vector.shape_cast %100 : vector<192xf32> to vector<1x1x1x192xf32>
      %102 = arith.addf %arg8, %101 : vector<1x1x1x192xf32>
      %c0_84 = arith.constant 0 : index
      %103 = arith.index_cast %arg6 : i32 to index
      %c0_85 = arith.constant 0 : index
      %c0_86 = arith.constant 0 : index
      %104 = vector.load %arg4[%c0_84, %103, %c0_85, %c0_86] : memref<1x28x28x192xf32, #tpu.memory_space<vmem>>, vector<1x1x28x192xf32>
      tpu.vector_store %arg4[%c0_84, %103, %c0_85, %c0_86], %95 {strides = array<i32>} : memref<1x28x28x192xf32, #tpu.memory_space<vmem>>, vector<1x1x28x192xf32>,
      scf.yield %98, %102 : vector<1x1x1x192xf32>, vector<1x1x1x192xf32>
    }
    %c28_i32_54 = arith.constant 28 : i32
    %cst_55 = arith.constant 0.00127551018 : f32
    %28 = vector.broadcast %cst_55 : f32 to vector<1x1x1x192xf32>
    %29 = arith.mulf %27#0, %28 : vector<1x1x1x192xf32>
    %cst_56 = arith.constant 0.00127551018 : f32
    %30 = vector.broadcast %cst_56 : f32 to vector<1x1x1x192xf32>
    %31 = arith.mulf %27#1, %30 : vector<1x1x1x192xf32>
    %32 = arith.mulf %29, %29 : vector<1x1x1x192xf32>
    %33 = arith.subf %31, %32 : vector<1x1x1x192xf32>
    %cst_57 = arith.constant 0.000000e+00 : f32
    %34 = vector.broadcast %cst_57 : f32 to vector<1x1x1x192xf32>
    %35 = arith.maximumf %33, %34 : vector<1x1x1x192xf32>
    %c0_58 = arith.constant 0 : index
    %c0_59 = arith.constant 0 : index
    %c0_60 = arith.constant 0 : index
    %c0_61 = arith.constant 0 : index
    %36 = vector.load %arg2[%c0_58, %c0_59, %c0_60, %c0_61] : memref<1x1x1x192xf32, #tpu.memory_space<vmem>>, vector<1x1x1x192xf32>
    %cst_62 = arith.constant 1.000000e-03 : f32
    %37 = vector.broadcast %cst_62 : f32 to vector<1x1x1x192xf32>
    %38 = arith.addf %35, %37 : vector<1x1x1x192xf32>
    %39 = math.rsqrt %38 : vector<1x1x1x192xf32>
    %40 = arith.mulf %36, %39 : vector<1x1x1x192xf32>
    %c0_63 = arith.constant 0 : index
    %c0_64 = arith.constant 0 : index
    %c0_65 = arith.constant 0 : index
    %c0_66 = arith.constant 0 : index
    %41 = vector.load %arg3[%c0_63, %c0_64, %c0_65, %c0_66] : memref<1x1x1x192xf32, #tpu.memory_space<vmem>>, vector<1x1x1x192xf32>
    %42 = arith.mulf %29, %40 : vector<1x1x1x192xf32>
    %43 = arith.subf %41, %42 : vector<1x1x1x192xf32>
    %44 = vector.shape_cast %40 : vector<1x1x1x192xf32> to vector<1x1x1x192xf32>
    %45 = vector.broadcast %44 : vector<1x1x1x192xf32> to vector<1x1x28x192xf32>
    %46 = vector.shape_cast %43 : vector<1x1x1x192xf32> to vector<1x1x1x192xf32>
    %47 = vector.broadcast %46 : vector<1x1x1x192xf32> to vector<1x1x28x192xf32>
    %c0_i32_67 = arith.constant 0 : i32
    %c28_i32_68 = arith.constant 28 : i32
    %48 = arith.addi %c0_i32_67, %c28_i32_68 : i32
    %c1_i32_69 = arith.constant 1 : i32
    scf.for %arg6 = %c0_i32_67 to %48 step %c1_i32_69  : i32 {
      %c1_i32_71 = arith.constant 1 : i32
      %49 = arith.muli %arg6, %c1_i32_71 : i32
      %c0_i32_72 = arith.constant 0 : i32
      %50 = arith.addi %c0_i32_72, %49 : i32
      %c0_73 = arith.constant 0 : index
      %51 = arith.index_cast %50 : i32 to index
      %c0_74 = arith.constant 0 : index
      %c0_75 = arith.constant 0 : index
      %52 = vector.load %arg4[%c0_73, %51, %c0_74, %c0_75] : memref<1x28x28x192xf32, #tpu.memory_space<vmem>>, vector<1x1x28x192xf32>
      %53 = arith.mulf %52, %45 : vector<1x1x28x192xf32>
      %54 = arith.addf %53, %47 : vector<1x1x28x192xf32>
      %c0_76 = arith.constant 0 : index
      %55 = arith.index_cast %50 : i32 to index
      %c0_77 = arith.constant 0 : index
      %c0_78 = arith.constant 0 : index
      %56 = vector.load %arg4[%c0_76, %55, %c0_77, %c0_78] : memref<1x28x28x192xf32, #tpu.memory_space<vmem>>, vector<1x1x28x192xf32>
      tpu.vector_store %arg4[%c0_76, %55, %c0_77, %c0_78], %54 {strides = array<i32>} : memref<1x28x28x192xf32, #tpu.memory_space<vmem>>, vector<1x1x28x192xf32>,
    }
    %c28_i32_70 = arith.constant 28 : i32
    return
  }
}

</mosaic_0001>

<bundles_post_ra>
// kernel: relu_dwconv_bn.1
= control target key start
LH: loop header
LB: loop body
LE: loop exit
PB: predicated region body
PF: predicated region fallthrough
CT: control target
= control target key end

     0   :  { %v1020_v0 = vmov 0.0   ;;  %vm18_vm0 = vcmask 523264   ;;  %v37_v1 = vlaneseq  ;;  %vm25_vm1 = vcmask 521216   ;;  %s1240_s15 = smov 0   ;;  %s1663_s0 = inlined_call_operand.vmem [shape: f32[1,28,28,192], index: 0, kind: input, shape index: {}]   ;;  %s1664_s1 = inlined_call_operand.vmem [shape: f32[3,3,1,192], index: 1, kind: input, shape index: {}]   ;;  %s1665_s2 = inlined_call_operand.vmem [shape: f32[1,1,1,192], index: 2, kind: input, shape index: {}]   ;;  %s1666_s3 = inlined_call_operand.vmem [shape: f32[1,1,1,192], index: 3, kind: input, shape index: {}]   ;;  %s1667_s4 = inlined_call_operand.vmem [shape: f32[1,28,28,192], index: 4, kind: output, shape index: {}]  }
   0x1   :  { %17 = vst [vmem:[#allocation2] sm:$0xff] %v1020_v0 }
   0x2   :  { %20 = vst [vmem:[#allocation2 + $0x10] sm:$0xff] %v1020_v0  ;;  %vm1066_vm2 = vcmp.lt.s32.totalorder %v37_v1, 192 }
   0x3   :  { %22 = vst [vmem:[#allocation2 + $0x20] sm:$0xff] %v1020_v0 }
   0x4   :  { %24 = vst [vmem:[#allocation2 + $0x30] sm:$0x3f] %v1020_v0 }
   0x5   :  { %28 = vst [vmem:[#allocation2 + $0x740] sm:$0xff] %v1020_v0 }
   0x6   :  { %30 = vst [vmem:[#allocation2 + $0x750] sm:$0xff] %v1020_v0 }
   0x7   :  { %32 = vst [vmem:[#allocation2 + $0x760] sm:$0xff] %v1020_v0 }
   0x8   :  { %34 = vst [vmem:[#allocation2 + $0x770] sm:$0x3f] %v1020_v0 }
   0x9   :  { %19 = vst.msk [vmem:[#allocation2 + $0x8] sm:$0xff] %vm18_vm0, %v1020_v0 }
   0xa   :  { %21 = vst.msk [vmem:[#allocation2 + $0x18] sm:$0xff] %vm18_vm0, %v1020_v0 }
   0xb   :  { %23 = vst.msk [vmem:[#allocation2 + $0x28] sm:$0xff] %vm18_vm0, %v1020_v0 }
   0xc   :  { %29 = vst.msk [vmem:[#allocation2 + $0x748] sm:$0xff] %vm18_vm0, %v1020_v0 }
   0xd   :  { %31 = vst.msk [vmem:[#allocation2 + $0x758] sm:$0xff] %vm18_vm0, %v1020_v0 }
   0xe   :  { %33 = vst.msk [vmem:[#allocation2 + $0x768] sm:$0xff] %vm18_vm0, %v1020_v0 }
   0xf   :  { %26 = vst.msk [vmem:[#allocation2 + $0x38] sm:$0x3f] %vm25_vm1, %v1020_v0 }
  0x10   :  { %35 = vst.msk [vmem:[#allocation2 + $0x778] sm:$0x3f] %vm25_vm1, %v1020_v0 }
  0x11   :  { %41 = vst.msk [vmem:[#allocation2 + $0x40] ss:$8 sm:$0x3] %vm1066_vm2, %v1020_v0 }
  0x12   :  { %44 = vst.msk [vmem:[#allocation2 + $0x80] ss:$8 sm:$0x3] %vm1066_vm2, %v1020_v0 }
  0x13   :  { %47 = vst.msk [vmem:[#allocation2 + $0xc0] ss:$8 sm:$0x3] %vm1066_vm2, %v1020_v0 }
  0x14   :  { %50 = vst.msk [vmem:[#allocation2 + $0x100] ss:$8 sm:$0x3] %vm1066_vm2, %v1020_v0 }
  0x15   :  { %53 = vst.msk [vmem:[#allocation2 + $0x140] ss:$8 sm:$0x3] %vm1066_vm2, %v1020_v0 }
  0x16   :  { %56 = vst.msk [vmem:[#allocation2 + $0x180] ss:$8 sm:$0x3] %vm1066_vm2, %v1020_v0 }
  0x17   :  { %59 = vst.msk [vmem:[#allocation2 + $0x1c0] ss:$8 sm:$0x3] %vm1066_vm2, %v1020_v0 }
  0x18   :  { %62 = vst.msk [vmem:[#allocation2 + $0x200] ss:$8 sm:$0x3] %vm1066_vm2, %v1020_v0 }
  0x19   :  { %65 = vst.msk [vmem:[#allocation2 + $0x240] ss:$8 sm:$0x3] %vm1066_vm2, %v1020_v0 }
  0x1a   :  { %68 = vst.msk [vmem:[#allocation2 + $0x280] ss:$8 sm:$0x3] %vm1066_vm2, %v1020_v0 }
  0x1b   :  { %71 = vst.msk [vmem:[#allocation2 + $0x2c0] ss:$8 sm:$0x3] %vm1066_vm2, %v1020_v0 }
  0x1c   :  { %74 = vst.msk [vmem:[#allocation2 + $0x300] ss:$8 sm:$0x3] %vm1066_vm2, %v1020_v0 }
  0x1d   :  { %77 = vst.msk [vmem:[#allocation2 + $0x340] ss:$8 sm:$0x3] %vm1066_vm2, %v1020_v0 }
  0x1e   :  { %80 = vst.msk [vmem:[#allocation2 + $0x380] ss:$8 sm:$0x3] %vm1066_vm2, %v1020_v0 }
  0x1f   :  { %83 = vst.msk [vmem:[#allocation2 + $0x3c0] ss:$8 sm:$0x3] %vm1066_vm2, %v1020_v0 }
  0x20   :  { %86 = vst.msk [vmem:[#allocation2 + $0x400] ss:$8 sm:$0x3] %vm1066_vm2, %v1020_v0 }
  0x21   :  { %89 = vst.msk [vmem:[#allocation2 + $0x440] ss:$8 sm:$0x3] %vm1066_vm2, %v1020_v0 }
  0x22   :  { %92 = vst.msk [vmem:[#allocation2 + $0x480] ss:$8 sm:$0x3] %vm1066_vm2, %v1020_v0 }
  0x23   :  { %95 = vst.msk [vmem:[#allocation2 + $0x4c0] ss:$8 sm:$0x3] %vm1066_vm2, %v1020_v0 }
  0x24   :  { %98 = vst.msk [vmem:[#allocation2 + $0x500] ss:$8 sm:$0x3] %vm1066_vm2, %v1020_v0 }
  0x25   :  { %101 = vst.msk [vmem:[#allocation2 + $0x540] ss:$8 sm:$0x3] %vm1066_vm2, %v1020_v0 }
  0x26   :  { %104 = vst.msk [vmem:[#allocation2 + $0x580] ss:$8 sm:$0x3] %vm1066_vm2, %v1020_v0 }
  0x27   :  { %107 = vst.msk [vmem:[#allocation2 + $0x5c0] ss:$8 sm:$0x3] %vm1066_vm2, %v1020_v0 }
  0x28   :  { %110 = vst.msk [vmem:[#allocation2 + $0x600] ss:$8 sm:$0x3] %vm1066_vm2, %v1020_v0 }
  0x29   :  { %113 = vst.msk [vmem:[#allocation2 + $0x640] ss:$8 sm:$0x3] %vm1066_vm2, %v1020_v0 }
  0x2a   :  { %116 = vst.msk [vmem:[#allocation2 + $0x680] ss:$8 sm:$0x3] %vm1066_vm2, %v1020_v0 }
  0x2b   :  { %119 = vst.msk [vmem:[#allocation2 + $0x6c0] ss:$8 sm:$0x3] %vm1066_vm2, %v1020_v0 }
  0x2c   :  { %122 = vst.msk [vmem:[#allocation2 + $0x700] ss:$8 sm:$0x3] %vm1066_vm2, %v1020_v0 }
  0x2d   :  { %125 = vst.msk [vmem:[#allocation2 + $0x75] ss:$8 sm:$0x3] %vm1066_vm2, %v1020_v0 }
  0x2e   :  { %128 = vst.msk [vmem:[#allocation2 + $0xb5] ss:$8 sm:$0x3] %vm1066_vm2, %v1020_v0 }
  0x2f   :  { %131 = vst.msk [vmem:[#allocation2 + $0xf5] ss:$8 sm:$0x3] %vm1066_vm2, %v1020_v0 }
  0x30   :  { %134 = vst.msk [vmem:[#allocation2 + $0x135] ss:$8 sm:$0x3] %vm1066_vm2, %v1020_v0 }
  0x31   :  { %137 = vst.msk [vmem:[#allocation2 + $0x175] ss:$8 sm:$0x3] %vm1066_vm2, %v1020_v0 }
  0x32   :  { %140 = vst.msk [vmem:[#allocation2 + $0x1b5] ss:$8 sm:$0x3] %vm1066_vm2, %v1020_v0 }
  0x33   :  { %143 = vst.msk [vmem:[#allocation2 + $0x1f5] ss:$8 sm:$0x3] %vm1066_vm2, %v1020_v0 }
  0x34   :  { %146 = vst.msk [vmem:[#allocation2 + $0x235] ss:$8 sm:$0x3] %vm1066_vm2, %v1020_v0 }
  0x35   :  { %149 = vst.msk [vmem:[#allocation2 + $0x275] ss:$8 sm:$0x3] %vm1066_vm2, %v1020_v0 }
  0x36   :  { %152 = vst.msk [vmem:[#allocation2 + $0x2b5] ss:$8 sm:$0x3] %vm1066_vm2, %v1020_v0 }
  0x37   :  { %155 = vst.msk [vmem:[#allocation2 + $0x2f5] ss:$8 sm:$0x3] %vm1066_vm2, %v1020_v0 }
  0x38   :  { %158 = vst.msk [vmem:[#allocation2 + $0x335] ss:$8 sm:$0x3] %vm1066_vm2, %v1020_v0 }
  0x39   :  { %161 = vst.msk [vmem:[#allocation2 + $0x375] ss:$8 sm:$0x3] %vm1066_vm2, %v1020_v0 }
  0x3a   :  { %164 = vst.msk [vmem:[#allocation2 + $0x3b5] ss:$8 sm:$0x3] %vm1066_vm2, %v1020_v0 }
  0x3b   :  { %167 = vst.msk [vmem:[#allocation2 + $0x3f5] ss:$8 sm:$0x3] %vm1066_vm2, %v1020_v0 }
  0x3c   :  { %170 = vst.msk [vmem:[#allocation2 + $0x435] ss:$8 sm:$0x3] %vm1066_vm2, %v1020_v0 }
  0x3d   :  { %173 = vst.msk [vmem:[#allocation2 + $0x475] ss:$8 sm:$0x3] %vm1066_vm2, %v1020_v0 }
  0x3e   :  { %176 = vst.msk [vmem:[#allocation2 + $0x4b5] ss:$8 sm:$0x3] %vm1066_vm2, %v1020_v0 }
  0x3f   :  { %179 = vst.msk [vmem:[#allocation2 + $0x4f5] ss:$8 sm:$0x3] %vm1066_vm2, %v1020_v0 }
  0x40   :  { %182 = vst.msk [vmem:[#allocation2 + $0x535] ss:$8 sm:$0x3] %vm1066_vm2, %v1020_v0 }
  0x41   :  { %185 = vst.msk [vmem:[#allocation2 + $0x575] ss:$8 sm:$0x3] %vm1066_vm2, %v1020_v0 }
  0x42   :  { %188 = vst.msk [vmem:[#allocation2 + $0x5b5] ss:$8 sm:$0x3] %vm1066_vm2, %v1020_v0 }
  0x43   :  { %191 = vst.msk [vmem:[#allocation2 + $0x5f5] ss:$8 sm:$0x3] %vm1066_vm2, %v1020_v0 }
  0x44   :  { %194 = vst.msk [vmem:[#allocation2 + $0x635] ss:$8 sm:$0x3] %vm1066_vm2, %v1020_v0 }
  0x45   :  { %197 = vst.msk [vmem:[#allocation2 + $0x675] ss:$8 sm:$0x3] %vm1066_vm2, %v1020_v0 }
  0x46   :  { %200 = vst.msk [vmem:[#allocation2 + $0x6b5] ss:$8 sm:$0x3] %vm1066_vm2, %v1020_v0 }
  0x47   :  { %203 = vst.msk [vmem:[#allocation2 + $0x6f5] ss:$8 sm:$0x3] %vm1066_vm2, %v1020_v0 }
  0x48   :  { %206 = vst.msk [vmem:[#allocation2 + $0x735] ss:$8 sm:$0x3] %vm1066_vm2, %v1020_v0 }
  0x49 LB: > { %s899_s16 = sshll.u32 %s994_s15, 6  ;;  %vm269_vm3 = vcmask 523265   ;;  %vm242_vm4 = vcmask 1040384   ;;  %vm276_vm5 = vcmask 520192   ;;  %s213_s15 = sadd.s32 1, %s994_s15   ;;  %s994_s15 = sphi %s1240_s15, %s213_s15  }
  0x4a   : > { %s216_s19 = scalar_lea.vmem %s1663_s0, %s899_s16  ;;  %s816_s20 = scalar_lea.vmem [#allocation2], %s899_s16 }
  0x4b   : > { %v217_v3 = vld [vmem:[%s216_s19] sm:$0xff]  ;;  %v218_v4 = vld [vmem:[%s216_s19 + $0x8] sm:$0xff]  ;;  %v219_v5 = vld [vmem:[%s216_s19 + $0x10] sm:$0xff]  ;;  %p210_p0 = scmp.ge.s32.totalorder %s213_s15, 28  }
  0x4c   : > { %v225_v6 = vmax.f32 %v217_v3, 0.0  ;;  %v226_v7 = vmax.f32 %v218_v4, 0.0  ;;  %v227_v8 = vmax.f32 %v219_v5, 0.0  ;;  %v220_v9 = vld [vmem:[%s216_s19 + $0x18] sm:$0xff]  ;;  %v221_v10 = vld [vmem:[%s216_s19 + $0x20] sm:$0xff]  ;;  %v222_v11 = vld [vmem:[%s216_s19 + $0x28] sm:$0xff] }
  0x4d   : > { %v228_v12 = vmax.f32 %v220_v9, 0.0  ;;  %v229_v13 = vmax.f32 %v221_v10, 0.0  ;;  %v230_v14 = vmax.f32 %v222_v11, 0.0  ;;  %v223_v15 = vld [vmem:[%s216_s19 + $0x30] sm:$0xf]  ;;  %v1306_v42 = vmov (%p210_p0), 0.0  }
  0x4e   : > { %v243_v16 = vrot.slane %v225_v6, 7  ;;  %v244_v17 = vrot.slane %v226_v7, 7  ;;  %v245_v18 = vrot.slane %v227_v8, 7  ;;  %v231_v19 = vmax.f32 %v223_v15, 0.0  ;;  %v224_v20 = vld [vmem:[%s216_s19 + $0x38] sm:$0xf] }
  0x4f   : > { %v247_v21 = vrot.slane %v228_v12, 7  ;;  %v249_v22 = vrot.slane %v229_v13, 7  ;;  %v251_v23 = vrot.slane %v230_v14, 7  ;;  %v232_v24 = vmax.f32 %v224_v20, 0.0  ;;  %v1264_v33 = vld [vmem:[%s1664_s1] sm:$0x3] (%p210_p0) }
  0x50   : > { %860 = vst [vmem:[%s816_s20 + $0x40] sm:$0xfe] %v243_v16  ;;  %v246_v25 = vsel %vm242_vm4, %v243_v16, %v245_v18  ;;  %v253_v26 = vrot.slane %v231_v19, 7  ;;  %v1269_v34 = vld [vmem:[%s1664_s1 + $0x2] sm:$0x3] (%p210_p0)  ;;  %v1308_v43 = vmov (%p210_p0), 0.0  }
  0x51   : > { %861 = vst.msk [vmem:[%s816_s20 + $0x48] sm:$0xfe] %vm269_vm3, %v244_v17  ;;  %v248_v27 = vsel %vm242_vm4, %v244_v17, %v247_v21  ;;  %v250_v28 = vsel %vm242_vm4, %v245_v18, %v249_v22  ;;  %v255_v29 = vrot.slane %v232_v24, 7  ;;  %v252_v30 = vsel %vm242_vm4, %v247_v21, %v251_v23  ;;  %v1274_v35 = vld [vmem:[%s1664_s1 + $0x4] sm:$0x3] (%p210_p0)  ;;  %s1314_s12 = smov (%p210_p0), 0  }
  0x52   : > { %862 = vst [vmem:[%s816_s20 + $0x50] sm:$0xff] %v246_v25  ;;  %v254_v31 = vsel %vm242_vm4, %v249_v22, %v253_v26  ;;  %v1279_v36 = vld [vmem:[%s1664_s1 + $0x6] sm:$0x3] (%p210_p0)  ;;  %v1284_v37 = vld [vmem:[%s1664_s1 + $0x8] sm:$0x3] (%p210_p0)  ;;  %v1310_v44 = vmov (%p210_p0), 0.0  }
  0x53   : > { %863 = vst.msk [vmem:[%s816_s20 + $0x58] sm:$0xff] %vm18_vm0, %v248_v27  ;;  %v256_v32 = vsel %vm242_vm4, %v251_v23, %v255_v29  ;;  %212 = sbr.rel (!%p210_p0) target bundleno = 73 (0x49), region = 129  ;;  %v1289_v38 = vld [vmem:[%s1664_s1 + $0xa] sm:$0x3] (%p210_p0)  ;;  %v1294_v39 = vld [vmem:[%s1664_s1 + $0xc] sm:$0x3] (%p210_p0) }
  0x54   : > { %864 = vst [vmem:[%s816_s20 + $0x60] sm:$0xff] %v250_v28  ;;  %v1299_v40 = vld [vmem:[%s1664_s1 + $0xe] sm:$0x3] (%p210_p0)  ;;  %v1304_v41 = vld [vmem:[%s1664_s1 + $0x10] sm:$0x3] (%p210_p0)  ;;  %v1312_v45 = vmov (%p210_p0), 0.0  }
  0x55   : > { %865 = vst.msk [vmem:[%s816_s20 + $0x68] sm:$0xff] %vm18_vm0, %v252_v30 }
  0x56   : > { %866 = vst [vmem:[%s816_s20 + $0x70] sm:$0x1f] %v254_v31 }
  0x57   : > { %867 = vst.msk [vmem:[%s816_s20 + $0x78] sm:$0x1f] %vm276_vm5, %v256_v32 }
  0x58   :  { %1675 = vst [vmem:[#allocation3_spill] sm:$0xff] %v1264_v33 }
  0x59   :  { %1676 = vst [vmem:[#allocation4_spill] sm:$0xff] %v1269_v34 }
  0x5a   :  { %1677 = vst [vmem:[#allocation5_spill] sm:$0xff] %v1274_v35 }
  0x5b LB: > { %v1341_v49 = vperm.slane %v1279_v36, 0  ;;  %v1344_v50 = vperm.slane %v1284_v37, 0  ;;  %v1347_v51 = vperm.slane %v1289_v38, 0  ;;  %s900_s1 = sshll.u32 %s1014_s12, 6  ;;  %v1351_v52 = vperm.slane %v1294_v39, 0  ;;  %s300_s12 = sadd.s32 1, %s1014_s12   ;;  %v1006_v44 = vphi %v1310_v44, %v1685_v44   ;;  %v1002_v43 = vphi %v1308_v43, %v1684_v43   ;;  %v998_v42 = vphi %v1306_v42, %v1683_v42   ;;  %s1014_s12 = sphi %s1314_s12, %s300_s12   ;;  %v1010_v45 = vphi %v1312_v45, %v1686_v45  }
  0x5c   : > { %v1354_v53 = vperm.slane %v1299_v40, 0  ;;  %v1357_v54 = vperm.slane %v1304_v41, 0  ;;  %vm513_vm6 = vcmask 1046528   ;;  %v1369_v58 = vperm.slane %v1279_v36, 1  ;;  %s1376_s13 = scalar_lea.vmem [#allocation2], %s900_s1  ;;  %s1464_s16 = scalar_lea.vmem %s1667_s4, %s900_s1 }
  0x5d   : > { %v1372_v59 = vperm.slane %v1284_v37, 1  ;;  %vm552_vm7 = vcmask 1045504   ;;  %v1384_v63 = vperm.slane %v1289_v38, 1  ;;  %v1387_v0 = vperm.slane %v1294_v39, 1  ;;  %p297_p1 = scmp.ge.s32.totalorder %s300_s12, 28  }
  0x5e   : > { %v308_v60 = vld [vmem:[%s1376_s13] sm:$0xff]  ;;  %v1380_v61 = vld [vmem:[%s1376_s13 + $0x10] sm:$0xff]  ;;  %v1390_v1 = vperm.slane %v1299_v40, 1  ;;  %v309_v21 = vld [vmem:[%s1376_s13 + $0x8] sm:$0xff]  ;;  %vm585_vm8 = vcmask 1043456   ;;  %vm599_vm9 = vcmask 519168  }
  0x5f   : > { %v1680_v33 = vld [vmem:[#allocation3_spill] sm:$0xff]  ;;  %v1398_v6 = vld [vmem:[%s1376_s13 + $0x50] sm:$0xff]  ;;  %v1419_v22 = vld [vmem:[%s1376_s13 + $0x18] sm:$0xff]  ;;  %s1629_s21 = smov (%p297_p1), 0  }
  0x60   : > { %v1679_v34 = vld [vmem:[#allocation4_spill] sm:$0xff]  ;;  %v1332_v46 = vperm.slane %v1680_v33, 0  ;;  %v1360_v55 = vperm.slane %v1680_v33, 1  ;;  %v879_v62 = vld [vmem:[%s1376_s13 + $0x40] sm:$0xff]  ;;  %v1402_v8 = vld [vmem:[%s1376_s13 + $0x90] sm:$0xff]  ;;  %v395_v12 = vmul.f32 %v1398_v6, %v1344_v50  ;;  %v416_v14 = vmul.f32 %v1398_v6, %v1347_v51 }
  0x61   : > { %v1678_v35 = vld [vmem:[#allocation5_spill] sm:$0xff]  ;;  %v1335_v47 = vperm.slane %v1679_v34, 0  ;;  %v1363_v56 = vperm.slane %v1679_v34, 1  ;;  %v888_v7 = vld [vmem:[%s1376_s13 + $0x80] sm:$0xff]  ;;  %v372_v10 = vmul.f32 %v879_v62, %v1341_v49  ;;  %v393_v11 = vmul.f32 %v879_v62, %v1344_v50  ;;  %v880_v31 = vld [vmem:[%s1376_s13 + $0x48] sm:$0xff] }
  0x62   : > { %v1338_v48 = vperm.slane %v1678_v35, 0  ;;  %v1366_v57 = vperm.slane %v1678_v35, 1  ;;  %v321_v2 = vmul.f32 %v1332_v46, %v308_v60  ;;  %v414_v13 = vmul.f32 %v879_v62, %v1347_v51 }
  0x63   : > { %v334_v3 = vmul.f32 %v1335_v47, %v308_v60  ;;  %v336_v4 = vmul.f32 %v1335_v47, %v1380_v61  ;;  %v447_v15 = vmul.f32 %v888_v7, %v1351_v52  ;;  %v468_v16 = vmul.f32 %v888_v7, %v1354_v53 }
  0x64   : > { %v347_v5 = vmul.f32 %v1338_v48, %v308_v60  ;;  %v349_v9 = vmul.f32 %v1338_v48, %v1380_v61  ;;  %v380_v17 = vadd.f32 %v372_v10, %v321_v2  ;;  %v470_v20 = vmul.f32 %v1402_v8, %v1354_v53 }
  0x65   : > { %v401_v18 = vadd.f32 %v393_v11, %v334_v3  ;;  %v403_v19 = vadd.f32 %v395_v12, %v336_v4  ;;  %v489_v25 = vmul.f32 %v888_v7, %v1357_v54  ;;  %v491_v26 = vmul.f32 %v1402_v8, %v1357_v54  ;;  %v1434_v3 = vld [vmem:[%s1376_s13 + $0x58] sm:$0xff] }
  0x66   : > { %v422_v23 = vadd.f32 %v414_v13, %v347_v5  ;;  %v424_v24 = vadd.f32 %v416_v14, %v349_v9  ;;  %v455_v27 = vadd.f32 %v447_v15, %v380_v17  ;;  %v322_v30 = vmul.f32 %v1360_v55, %v309_v21 }
  0x67   : > { %v476_v28 = vadd.f32 %v468_v16, %v401_v18  ;;  %v1424_v29 = vadd.f32 %v470_v20, %v403_v19  ;;  %v335_v62 = vmul.f32 %v1363_v56, %v309_v21  ;;  %v337_v2 = vmul.f32 %v1363_v56, %v1419_v22  ;;  %v889_v18 = vld [vmem:[%s1376_s13 + $0x88] sm:$0xff]  ;;  %v891_v19 = vld [vmem:[%s1376_s13 + $0x98] sm:$0xff] }
  0x68   : > { %v497_v32 = vadd.f32 %v489_v25, %v422_v23  ;;  %v1428_v60 = vadd.f32 %v491_v26, %v424_v24  ;;  %v348_v7 = vmul.f32 %v1366_v57, %v309_v21  ;;  %v350_v9 = vmul.f32 %v1366_v57, %v1419_v22  ;;  %v1457_v25 = vld [vmem:[%s1376_s13 + $0x20] sm:$0xff] }
  0x69   : > { %v514_v4 = vrot.slane %v476_v28, 1  ;;  %v1669_v5 = vrot.slane %v1424_v29, 1  ;;  %v373_v12 = vmul.f32 %v880_v31, %v1369_v58  ;;  %v394_v13 = vmul.f32 %v880_v31, %v1372_v59 }
  0x6a   : > { %v553_v10 = vrot.slane %v497_v32, 2  ;;  %v1668_v11 = vrot.slane %v1428_v60, 2  ;;  %v396_v15 = vmul.f32 %v1434_v3, %v1372_v59  ;;  %v415_v16 = vmul.f32 %v880_v31, %v1384_v63 }
  0x6b   : > { %v516_v14 = vsel %vm513_vm6, %v514_v4, %v1669_v5  ;;  %v417_v17 = vmul.f32 %v1434_v3, %v1384_v63  ;;  %v381_v23 = vadd.f32 %v373_v12, %v322_v30  ;;  %v402_v24 = vadd.f32 %v394_v13, %v335_v62  ;;  %v1475_v4 = vld [vmem:[%s1376_s13 + $0x60] sm:$0xff] }
  0x6c   : > { %v536_v20 = vadd.f32 %v516_v14, %v455_v27  ;;  %v555_v21 = vsel %vm552_vm7, %v553_v10, %v1668_v11  ;;  %v404_v26 = vadd.f32 %v396_v15, %v337_v2  ;;  %v423_v28 = vadd.f32 %v415_v16, %v348_v7  ;;  %v313_v11 = vld [vmem:[%s1376_s13 + $0x28] sm:$0xff] }
  0x6d   : > { %v448_v31 = vmul.f32 %v889_v18, %v1387_v0  ;;  %v469_v32 = vmul.f32 %v889_v18, %v1390_v1  ;;  %v471_v30 = vmul.f32 %v891_v19, %v1390_v1  ;;  %v1472_v62 = vperm.slane %v1304_v41, 1 }
  0x6e   : > { %v1467_v27 = vadd.f32 %v555_v21, %v536_v20  ;;  %v425_v10 = vadd.f32 %v417_v17, %v350_v9  ;;  %v323_v12 = vmul.f32 %v1332_v46, %v1380_v61  ;;  %v338_v2 = vmul.f32 %v1335_v47, %v1457_v25  ;;  %v892_v21 = vld [vmem:[%s1376_s13 + $0xa0] sm:$0xff] }
  0x6f   : > { %v351_v7 = vmul.f32 %v1338_v48, %v1457_v25  ;;  %v456_v13 = vadd.f32 %v448_v31, %v381_v23  ;;  %v477_v14 = vadd.f32 %v469_v32, %v402_v24  ;;  %v1485_v15 = vadd.f32 %v471_v30, %v404_v26 }
  0x70   : > { %645 = vst [vmem:[%s1464_s16] sm:$0xff] %v1467_v27  ;;  %v490_v16 = vmul.f32 %v889_v18, %v1472_v62  ;;  %v492_v9 = vmul.f32 %v891_v19, %v1472_v62  ;;  %v374_v61 = vmul.f32 %v1398_v6, %v1341_v49  ;;  %v397_v17 = vmul.f32 %v1475_v4, %v1344_v50 }
  0x71   : > { %v418_v20 = vmul.f32 %v1475_v4, %v1347_v51  ;;  %v517_v24 = vrot.slane %v477_v14, 1  ;;  %v518_v26 = vrot.slane %v1485_v15, 1  ;;  %v449_v18 = vmul.f32 %v1402_v8, %v1351_v52  ;;  %v884_v14 = vld [vmem:[%s1376_s13 + $0x68] sm:$0xff] }
  0x72   : > { %v498_v23 = vadd.f32 %v490_v16, %v423_v28  ;;  %v1499_v31 = vadd.f32 %v492_v9, %v425_v10  ;;  %v382_v32 = vadd.f32 %v374_v61, %v323_v12  ;;  %v405_v30 = vadd.f32 %v397_v17, %v338_v2  ;;  %v893_v9 = vld [vmem:[%s1376_s13 + $0xa8] sm:$0xff] }
  0x73   : > { %v426_v6 = vadd.f32 %v418_v20, %v351_v7  ;;  %v519_v5 = vsel %vm513_vm6, %v517_v24, %v518_v26  ;;  %v472_v34 = vmul.f32 %v892_v21, %v1354_v53  ;;  %v493_v28 = vmul.f32 %v892_v21, %v1357_v54 }
  0x74   : > { %v556_v33 = vrot.slane %v498_v23, 2  ;;  %v537_v16 = vadd.f32 %v519_v5, %v456_v13  ;;  %v557_v15 = vrot.slane %v1499_v31, 2  ;;  %v457_v35 = vadd.f32 %v449_v18, %v382_v32 }
  0x75   : > { %v324_v8 = vmul.f32 %v1360_v55, %v1419_v22  ;;  %v1509_v10 = vadd.f32 %v472_v34, %v405_v30  ;;  %v1511_v12 = vadd.f32 %v493_v28, %v426_v6  ;;  %v339_v2 = vmul.f32 %v1363_v56, %v313_v11 }
  0x76   : > { %v352_v7 = vmul.f32 %v1366_v57, %v313_v11  ;;  %v558_v61 = vsel %vm552_vm7, %v556_v33, %v557_v15  ;;  %v375_v5 = vmul.f32 %v1434_v3, %v1369_v58  ;;  %v398_v13 = vmul.f32 %v884_v14, %v1372_v59  ;;  %v314_v3 = vld [vmem:[%s1376_s13 + $0x30] sm:$0x3f] }
  0x77   : > { %v419_v22 = vmul.f32 %v884_v14, %v1384_v63  ;;  %v1521_v34 = vadd.f32 %v558_v61, %v537_v16  ;;  %v520_v17 = vrot.slane %v1509_v10, 1  ;;  %v559_v20 = vrot.slane %v1511_v12, 2  ;;  %v894_v12 = vld [vmem:[%s1376_s13 + $0xb0] sm:$0x3f] }
  0x78   : > { %v450_v23 = vmul.f32 %v891_v19, %v1387_v0  ;;  %v383_v24 = vadd.f32 %v375_v5, %v324_v8  ;;  %v406_v18 = vadd.f32 %v398_v13, %v339_v2  ;;  %v473_v31 = vmul.f32 %v893_v9, %v1390_v1  ;;  %v885_v8 = vld [vmem:[%s1376_s13 + $0x70] sm:$0x3f] }
  0x79   : > { %v427_v33 = vadd.f32 %v419_v22, %v352_v7  ;;  %646 = vst.msk [vmem:[%s1464_s16 + $0x8] sm:$0xff] %vm18_vm0, %v1521_v34  ;;  %v1681_v32 = vrot.slane %v1424_v29, 1  ;;  %v1682_v6 = vrot.slane %v1428_v60, 2  ;;  %v494_v19 = vmul.f32 %v893_v9, %v1472_v62 }
  0x7a   : > { %v1537_v10 = vadd.f32 %v473_v31, %v406_v18  ;;  %v458_v2 = vadd.f32 %v450_v23, %v383_v24  ;;  %v325_v7 = vmul.f32 %v1332_v46, %v1457_v25  ;;  %v340_v29 = vmul.f32 %v1335_v47, %v314_v3  ;;  %v315_v18 = vld [vmem:[%s1376_s13 + $0x38] sm:$0x3f] }
  0x7b   : > { %v521_v30 = vsel %vm513_vm6, %v1681_v32, %v520_v17  ;;  %v560_v28 = vsel %vm552_vm7, %v1682_v6, %v559_v20  ;;  %v353_v61 = vmul.f32 %v1338_v48, %v314_v3  ;;  %v1546_v5 = vadd.f32 %v494_v19, %v427_v33 }
  0x7c   : > { %v538_v16 = vadd.f32 %v521_v30, %v457_v35  ;;  %v522_v35 = vrot.slane %v1537_v10, 1  ;;  %v376_v13 = vmul.f32 %v1475_v4, %v1341_v49  ;;  %v399_v22 = vmul.f32 %v885_v8, %v1344_v50  ;;  %v886_v30 = vld [vmem:[%s1376_s13 + $0x78] sm:$0x3f] }
  0x7d   : > { %v420_v23 = vmul.f32 %v885_v8, %v1347_v51  ;;  %v451_v24 = vmul.f32 %v892_v21, %v1351_v52  ;;  %v474_v25 = vmul.f32 %v894_v12, %v1354_v53  ;;  %v561_v48 = vrot.slane %v1546_v5, 2 }
  0x7e   : > { %v577_v60 = vadd.f32 %v560_v28, %v538_v16  ;;  %v523_v47 = vsel %vm513_vm6, %v518_v26, %v522_v35  ;;  %v384_v31 = vadd.f32 %v376_v13, %v325_v7  ;;  %v407_v32 = vadd.f32 %v399_v22, %v340_v29  ;;  %v895_v7 = vld [vmem:[%s1376_s13 + $0xb8] sm:$0x3f] }
  0x7f   : > { %v539_v33 = vadd.f32 %v523_v47, %v458_v2  ;;  %v428_v4 = vadd.f32 %v420_v23, %v353_v61  ;;  %v562_v50 = vsel %vm552_vm7, %v557_v15, %v561_v48  ;;  %v495_v51 = vmul.f32 %v894_v12, %v1357_v54 }
  0x80   : > { %647 = vst [vmem:[%s1464_s16 + $0x10] sm:$0xff] %v577_v60  ;;  %v326_v21 = vmul.f32 %v1360_v55, %v313_v11  ;;  %v459_v6 = vadd.f32 %v451_v24, %v384_v31  ;;  %v482_v28 = vadd.f32 %v474_v25, %v407_v32  ;;  %v341_v26 = vmul.f32 %v1363_v56, %v315_v18 }
  0x81   : > { %v578_v53 = vadd.f32 %v562_v50, %v539_v33  ;;  %v503_v16 = vadd.f32 %v495_v51, %v428_v4  ;;  %v354_v10 = vmul.f32 %v1366_v57, %v315_v18  ;;  %v377_v19 = vmul.f32 %v884_v14, %v1369_v58 }
  0x82   : > { %v400_v2 = vmul.f32 %v886_v30, %v1372_v59  ;;  %v524_v15 = vrot.slane %v482_v28, 1  ;;  %v421_v54 = vmul.f32 %v886_v30, %v1384_v63  ;;  %v452_v5 = vmul.f32 %v893_v9, %v1387_v0 }
  0x83   : > { %648 = vst.msk [vmem:[%s1464_s16 + $0x18] sm:$0xff] %vm18_vm0, %v578_v53  ;;  %v563_v29 = vrot.slane %v503_v16, 2  ;;  %v385_v11 = vadd.f32 %v377_v19, %v326_v21  ;;  %v475_v57 = vmul.f32 %v895_v7, %v1390_v1  ;;  %v496_v22 = vmul.f32 %v895_v7, %v1472_v62 }
  0x84   : > { %v408_v61 = vadd.f32 %v400_v2, %v341_v26  ;;  %v525_v56 = vsel %vm513_vm6, %v520_v17, %v524_v15  ;;  %v429_v13 = vadd.f32 %v421_v54, %v354_v10  ;;  %v327_v24 = vmul.f32 %v1332_v46, %v314_v3 }
  0x85   : > { %v540_v14 = vadd.f32 %v525_v56, %v459_v6  ;;  %v564_v59 = vsel %vm552_vm7, %v559_v20, %v563_v29  ;;  %v460_v25 = vadd.f32 %v452_v5, %v385_v11  ;;  %v378_v9 = vmul.f32 %v885_v8, %v1341_v49 }
  0x86   : > { %v483_v23 = vadd.f32 %v475_v57, %v408_v61  ;;  %v504_v47 = vadd.f32 %v496_v22, %v429_v13  ;;  %v453_v17 = vmul.f32 %v894_v12, %v1351_v52  ;;  %v610_v31 = vmul.f32 %v1467_v27, %v1467_v27 }
  0x87   : > { %v579_v63 = vadd.f32 %v564_v59, %v540_v14  ;;  %v594_v1 = vsel %vm18_vm0, %v1521_v34, 0.0  ;;  %v612_v20 = vmul.f32 %v577_v60, %v577_v60  ;;  %v611_v46 = vmul.f32 %v1521_v34, %v1521_v34 }
  0x88   : > { %v526_v33 = vrot.slane %v483_v23, 1  ;;  %v565_v62 = vrot.slane %v504_v47, 2  ;;  %v613_v3 = vmul.f32 %v578_v53, %v578_v53  ;;  %v386_v4 = vadd.f32 %v378_v9, %v327_v24 }
  0x89   : > { %649 = vst [vmem:[%s1464_s16 + $0x20] sm:$0xff] %v579_v63  ;;  %v583_v49 = vadd.f32 %v577_v60, %v1467_v27  ;;  %v595_v52 = vsel %vm18_vm0, %v578_v53, 0.0  ;;  %v328_v51 = vmul.f32 %v1360_v55, %v315_v18  ;;  %v379_v21 = vmul.f32 %v886_v30, %v1369_v58 }
  0x8a   : > { %v527_v32 = vsel %vm513_vm6, %v522_v35, %v526_v33  ;;  %v566_v12 = vsel %vm552_vm7, %v561_v48, %v565_v62  ;;  %v461_v50 = vadd.f32 %v453_v17, %v386_v4  ;;  %v454_v6 = vmul.f32 %v895_v7, %v1387_v0 }
  0x8b   : > { %v541_v8 = vadd.f32 %v527_v32, %v460_v25  ;;  %v618_v34 = vadd.f32 %v612_v20, %v610_v31  ;;  %v614_v28 = vmul.f32 %v579_v63, %v579_v63  ;;  %v628_v35 = vsel %vm18_vm0, %v611_v46, 0.0 }
  0x8c   : > { %v629_v27 = vsel %vm18_vm0, %v613_v3, 0.0  ;;  %v542_v60 = vadd.f32 %v524_v15, %v461_v50  ;;  %v387_v53 = vadd.f32 %v379_v21, %v328_v51  ;;  %v584_v16 = vadd.f32 %v583_v49, %v579_v63 }
  0x8d   : > { %v580_v26 = vadd.f32 %v566_v12, %v541_v8  ;;  %v596_v48 = vadd.f32 %v595_v52, %v594_v1  ;;  %v619_v30 = vadd.f32 %v618_v34, %v614_v28  ;;  %v630_v10 = vadd.f32 %v629_v27, %v628_v35 }
  0x8e   : > { %v581_v18 = vadd.f32 %v563_v29, %v542_v60  ;;  %v462_v58 = vadd.f32 %v454_v6, %v387_v53 }
  0x8f   : > { %650 = vst.msk [vmem:[%s1464_s16 + $0x28] sm:$0xff] %vm18_vm0, %v580_v26  ;;  %v615_v55 = vmul.f32 %v580_v26, %v580_v26  ;;  %v597_v0 = vsel %vm18_vm0, %v580_v26, 0.0 }
  0x90   : > { %v586_v19 = vsel %vm585_vm8, %v581_v18, 0.0  ;;  %v616_v2 = vmul.f32 %v581_v18, %v581_v18  ;;  %651 = vst [vmem:[%s1464_s16 + $0x30] sm:$0xf] %v581_v18  ;;  %v543_v7 = vadd.f32 %v526_v33, %v462_v58  ;;  %v598_v11 = vadd.f32 %v597_v0, %v596_v48 }
  0x91   : > { %v631_v15 = vsel %vm18_vm0, %v615_v55, 0.0  ;;  %v587_v54 = vadd.f32 %v586_v19, %v584_v16 }
  0x92   : > { %v620_v61 = vsel %vm585_vm8, %v616_v2, 0.0  ;;  %v582_v5 = vadd.f32 %v565_v62, %v543_v7  ;;  %v632_v13 = vadd.f32 %v631_v15, %v630_v10 }
  0x93   : > { %v588_v29 = vrot.slane %v587_v54, 4  ;;  %v621_v56 = vadd.f32 %v620_v61, %v619_v30 }
  0x94   : > { %v600_v57 = vsel %vm599_vm9, %v582_v5, 0.0  ;;  %v617_v14 = vmul.f32 %v582_v5, %v582_v5  ;;  %652 = vst.msk [vmem:[%s1464_s16 + $0x38] sm:$0xf] %vm599_vm9, %v582_v5 }
  0x95   : > { %v589_v59 = vadd.f32 %v588_v29, %v587_v54  ;;  %v622_v22 = vrot.slane %v621_v56, 4  ;;  %v601_v23 = vadd.f32 %v600_v57, %v598_v11 }
  0x96   : > { %v633_v24 = vsel %vm599_vm9, %v617_v14, 0.0 }
  0x97   : > { %v590_v63 = vrot.slane %v589_v59, 2  ;;  %v623_v25 = vadd.f32 %v622_v22, %v621_v56  ;;  %v602_v47 = vrot.slane %v601_v23, 4  ;;  %v634_v33 = vadd.f32 %v633_v24, %v632_v13 }
  0x99   : > { %v591_v9 = vadd.f32 %v590_v63, %v589_v59  ;;  %v624_v17 = vrot.slane %v623_v25, 2  ;;  %v603_v31 = vadd.f32 %v602_v47, %v601_v23  ;;  %v635_v1 = vrot.slane %v634_v33, 4  ;;  %v693_v59 = vld [vmem:[%s1666_s3] sm:$0x3] (%p297_p1) }
  0x9b   : > { %v592_v20 = vrot.slane %v591_v9, 1  ;;  %v625_v62 = vadd.f32 %v624_v17, %v623_v25  ;;  %v604_v46 = vrot.slane %v603_v31, 2  ;;  %v636_v3 = vadd.f32 %v635_v1, %v634_v33 }
  0x9d   : > { %v593_v32 = vadd.f32 %v592_v20, %v591_v9  ;;  %v626_v4 = vrot.slane %v625_v62, 1  ;;  %v605_v49 = vadd.f32 %v604_v46, %v603_v31  ;;  %v637_v52 = vrot.slane %v636_v3, 2 }
  0x9f   : > { %v608_v8 = vadd.f32 %v1010_v45, %v593_v32   ;;  %v627_v12 = vadd.f32 %v626_v4, %v625_v62  ;;  %v606_v50 = vrot.slane %v605_v49, 1  ;;  %v638_v51 = vadd.f32 %v637_v52, %v636_v3 }
  0xa1   : > { %v641_v21 = vadd.f32 %v1002_v43, %v627_v12   ;;  %v607_v6 = vadd.f32 %v606_v50, %v605_v49  ;;  %v639_v34 = vrot.slane %v638_v51, 1  ;;  %v1686_v45 = vmov %v608_v8 }
  0xa2   :  { %v653_v45 = vmul.f32 (%p297_p1), 0.0012755102, %v608_v8 }
  0xa3   : > { %v609_v28 = vadd.f32 %v1006_v44, %v607_v6   ;;  %v640_v26 = vadd.f32 %v639_v34, %v638_v51  ;;  %v1684_v43 = vmov %v641_v21  ;;  %299 = sbr.rel (!%p297_p1) target bundleno = 91 (0x5b), region = 140  ;;  %v655_v60 = vmul.f32 (%p297_p1), 0.0012755102, %v641_v21 }
  0xa4   :  { %v657_v16 = vmul.f32 (%p297_p1), %v653_v45, %v653_v45 }
  0xa5   : > { %v642_v35 = vadd.f32 %v998_v42, %v640_v26   ;;  %v1685_v44 = vmov %v609_v28  ;;  %v654_v27 = vmul.f32 (%p297_p1), 0.0012755102, %v609_v28 }
  0xa6   :  { %v659_v55 = vsub.f32 (%p297_p1), %v655_v60, %v657_v16  ;;  %v663_v44 = vld [vmem:[%s1665_s2] sm:$0x3] (%p297_p1) }
  0xa7   : > { %v1683_v42 = vmov %v642_v35  ;;  %v656_v53 = vmul.f32 (%p297_p1), 0.0012755102, %v642_v35  ;;  %v658_v48 = vmul.f32 (%p297_p1), %v654_v27, %v654_v27 }
  0xa8   :  { %v661_v58 = vmax.f32 %v659_v55, 0.0 }
  0xa9   :  { %v660_v18 = vsub.f32 %v656_v53, %v658_v48 }
  0xaa   :  { %v664_v30 = vadd.f32 0.001, %v661_v58 }
  0xab   :  { %v662_v0 = vmax.f32 %v660_v18, 0.0 }
  0xac   :  { %960 = vrsqrt.f32 %v664_v30  ;;  %vm672_vm10 = vweird.f32 %v664_v30 }
  0xad   :  { %v665_v10 = vadd.f32 0.001, %v662_v0 }
  0xaf   :  { %962 = vrsqrt.f32 %v665_v10  ;;  %vm682_vm12 = vweird.f32 %v665_v10 }
  0xb2   :  { %v961_v19 = vpop.eup %960 }
  0xb3   :  { %v667_v7 = vmul.f32 %v961_v19, %v664_v30  ;;  %vm673_vm11 = vweird.f32 %v961_v19 }
  0xb4   :  { %vm674_vm14 = vmor %vm672_vm10, %vm673_vm11 }
  0xb5   :  { %v963_v2 = vpop.eup %962  ;;  %v668_v54 = vmul.f32 %v961_v19, %v667_v7 }
  0xb6   :  { %v677_v15 = vmul.f32 %v963_v2, %v665_v10  ;;  %vm683_vm13 = vweird.f32 %v963_v2 }
  0xb7   :  { %v669_v36 = vmul.f32 0.5, %v668_v54  ;;  %vm684_vm15 = vmor %vm682_vm12, %vm683_vm13 }
  0xb8   :  { %v678_v11 = vmul.f32 %v963_v2, %v677_v15 }
  0xb9   :  { %v670_v38 = vsub.f32 1.5, %v669_v36 }
  0xba   :  { %v679_v37 = vmul.f32 0.5, %v678_v11 }
  0xbb   :  { %v671_v40 = vmul.f32 %v961_v19, %v670_v38 }
  0xbc   :  { %v680_v39 = vsub.f32 1.5, %v679_v37 }
  0xbd   :  { %v675_v42 = vsel %vm674_vm14, %v961_v19, %v671_v40 }
  0xbe   :  { %v681_v41 = vmul.f32 %v963_v2, %v680_v39 }
  0xc0   :  { %v685_v43 = vsel %vm684_vm15, %v963_v2, %v681_v41 }
  0xc1   :  { %v688_v61 = vrot.slane %v685_v43, 7 }
  0xc3   :  { %v690_v5 = vsel %vm242_vm4, %v675_v42, %v688_v61 }
  0xc4   :  { %v692_v29 = vmul.f32 %v690_v5, %v663_v44 }
  0xc6   :  { %v695_v56 = vperm.slane %v692_v29, 0  ;;  %v696_v13 = vperm.slane %v692_v29, 1 }
  0xc8   :  { %v699_v57 = vmul.f32 %v695_v56, %v653_v45  ;;  %v700_v14 = vmul.f32 %v696_v13, %v654_v27 }
  0xca   :  { %v703_v22 = vrot.slane %v700_v14, 7 }
  0xcc   :  { %v704_v23 = vsel %vm242_vm4, %v699_v57, %v703_v22 }
  0xcd   :  { %v706_v24 = vsub.f32 %v693_v59, %v704_v23 }
  0xcf   :  { %v708_v63 = vperm.slane %v706_v24, 0  ;;  %v709_v25 = vperm.slane %v706_v24, 1 }
  0xd0 LB: > { %s902_s2 = sshll.u32 %s1018_s21, 6  ;;  %s717_s21 = sadd.s32 1, %s1018_s21   ;;  %s1018_s21 = sphi %s1629_s21, %s717_s21  }
  0xd1   : > { %s1638_s24 = scalar_lea.vmem %s1667_s4, %s902_s2  ;;  %p714_p2 = scmp.ge.s32.totalorder %s717_s21, 28  }
  0xd2   : > { %v721_v47 = vld [vmem:[%s1638_s24] sm:$0xff]  ;;  %v722_v33 = vld [vmem:[%s1638_s24 + $0x8] sm:$0xff]  ;;  %v723_v9 = vld [vmem:[%s1638_s24 + $0x10] sm:$0xff] }
  0xd3   : > { %v729_v17 = vmul.f32 %v721_v47, %v695_v56  ;;  %v730_v31 = vmul.f32 %v722_v33, %v696_v13  ;;  %v731_v1 = vmul.f32 %v723_v9, %v695_v56  ;;  %v724_v20 = vld [vmem:[%s1638_s24 + $0x18] sm:$0xff]  ;;  %v725_v62 = vld [vmem:[%s1638_s24 + $0x20] sm:$0xff]  ;;  %v726_v46 = vld [vmem:[%s1638_s24 + $0x28] sm:$0xff] }
  0xd4   : > { %v732_v3 = vmul.f32 %v724_v20, %v696_v13  ;;  %v733_v32 = vmul.f32 %v725_v62, %v695_v56  ;;  %v734_v4 = vmul.f32 %v726_v46, %v696_v13  ;;  %v727_v49 = vld [vmem:[%s1638_s24 + $0x30] sm:$0xf]  ;;  %v728_v52 = vld [vmem:[%s1638_s24 + $0x38] sm:$0xf] }
  0xd5   : > { %v737_v8 = vadd.f32 %v729_v17, %v708_v63  ;;  %v738_v12 = vadd.f32 %v730_v31, %v709_v25  ;;  %v739_v50 = vadd.f32 %v731_v1, %v708_v63  ;;  %v735_v51 = vmul.f32 %v727_v49, %v695_v56 }
  0xd6   : > { %v740_v21 = vadd.f32 %v732_v3, %v709_v25  ;;  %v736_v6 = vmul.f32 %v728_v52, %v696_v13  ;;  %v741_v34 = vadd.f32 %v733_v32, %v708_v63  ;;  %v742_v28 = vadd.f32 %v734_v4, %v709_v25 }
  0xd7   : > { %745 = vst [vmem:[%s1638_s24] sm:$0xff] %v737_v8  ;;  %v743_v26 = vadd.f32 %v735_v51, %v708_v63 }
  0xd8   : > { %746 = vst.msk [vmem:[%s1638_s24 + $0x8] sm:$0xff] %vm18_vm0, %v738_v12  ;;  %v744_v35 = vadd.f32 %v736_v6, %v709_v25 }
  0xd9   : > { %747 = vst [vmem:[%s1638_s24 + $0x10] sm:$0xff] %v739_v50 }
  0xda   : > { %748 = vst.msk [vmem:[%s1638_s24 + $0x18] sm:$0xff] %vm18_vm0, %v740_v21 }
  0xdb   : > { %749 = vst [vmem:[%s1638_s24 + $0x20] sm:$0xff] %v741_v34 }
  0xdc   : > { %750 = vst.msk [vmem:[%s1638_s24 + $0x28] sm:$0xff] %vm18_vm0, %v742_v28 }
  0xdd   : > { %751 = vst [vmem:[%s1638_s24 + $0x30] sm:$0xf] %v743_v26  ;;  %716 = sbr.rel (!%p714_p2) target bundleno = 208 (0xd0), region = 151 }
  0xde   : > { %753 = vst.msk [vmem:[%s1638_s24 + $0x38] sm:$0xf] %vm599_vm9, %v744_v35 }

</bundles_post_ra>
